<compile_context>
chip_gen: v6e
topology: v6e:2x2x1
jax: 0.10.0
libtpu: 0.0.40
codegen_flags: <defaults>
</compile_context>

<pallas_src>
import math

import jax
import jax.numpy as jnp
from jax.experimental import pallas as pl
from jax.experimental.pallas import tpu as pltpu


# ----------------------------------------------------------------------------
# Pallas kernel: fused PET head  (token-1 row -> Linear -> ReLU -> Linear)
# ----------------------------------------------------------------------------
def pet_head_kernel(tok_ref, w1_ref, b1_ref, w2_ref, b2_ref, out_ref):
    # tok_ref: [TB, 1, H] — token-1 hidden states for this batch tile (VMEM).
    x = tok_ref[:, 0, :]                                   # [TB, H] direct ref load
    # dropout: identity (inference / eval mode)
    h = jnp.dot(x, w1_ref[...], preferred_element_type=jnp.float32) + b1_ref[...]
    h = jnp.maximum(h, 0.0)                                # ReLU
    y = jnp.dot(h, w2_ref[...], preferred_element_type=jnp.float32) + b2_ref[...]
    out_ref[...] = y.astype(out_ref.dtype)                 # lane-dense (padded) store


def pet_head(last_hidden_states, w1, b1, w2, b2, *, batch_tile=8):
    """Fused PET head: slice token 1 -> Linear(H, Hh) -> ReLU -> Linear(Hh, L)."""
    B, S, H = last_hidden_states.shape
    Hh = w1.shape[1]
    L = w2.shape[1]

    LANE = 128
    Hp = pl.cdiv(Hh, LANE) * LANE        # padded hidden width  (16  -> 128)
    Lp = pl.cdiv(L, LANE) * LANE         # padded logits width  (4   -> 128)

    # Zero-pad the head weights to lane-dense widths (exact — see header comment).
    # This is a few KiB and could equally be done once at parameter-setup time.
    w1p = jnp.pad(w1, ((0, 0), (0, Hp - Hh)))
    b1p = jnp.pad(b1, (0, Hp - Hh)).reshape(1, Hp)
    w2p = jnp.pad(w2, ((0, Hp - Hh), (0, Lp - L)))
    b2p = jnp.pad(b2, (0, Lp - L)).reshape(1, Lp)

    # Token-1 slice: only B*H elements ever reach the kernel; the full [B, S, H]
    # tensor is never DMA'd into VMEM.
    tok1 = last_hidden_states[:, 1:2, :]                   # [B, 1, H]

    TB = min(batch_tile, B)                                # batch tile per grid step
    nb = pl.cdiv(B, TB)

    # NOTE: at tiny head sizes this call is launch/DMA-overhead bound; the BERT pooler
    # (tanh(x[:, 0, :] @ Wp + bp)) reads the same tensor and could be fused here by
    # pulling tokens 0:2 — not done because the module's forward only returns logits.
    logits_padded = pl.pallas_call(
        pet_head_kernel,
        out_shape=jax.ShapeDtypeStruct((B, Lp), jnp.float32),
        grid=(nb,),
        in_specs=[
            pl.BlockSpec((TB, 1, H), lambda b: (b, 0, 0)),  # per-tile token-1 rows
            pl.BlockSpec((H, Hp), lambda b: (0, 0)),        # weights resident across grid
            pl.BlockSpec((1, Hp), lambda b: (0, 0)),
            pl.BlockSpec((Hp, Lp), lambda b: (0, 0)),
            pl.BlockSpec((1, Lp), lambda b: (0, 0)),
        ],
        out_specs=pl.BlockSpec((TB, Lp), lambda b: (b, 0)),
        compiler_params=pltpu.CompilerParams(
            # batch tiles are independent -> shard across TensorCores on v7x
            dimension_semantics=("parallel",)),
    )(tok1, w1p, b1p, w2p, b2p)
    return logits_padded[:, :L]


# ----------------------------------------------------------------------------
# Minimal deterministic synthetic "BERT" (plain-JAX glue; stands in for the
# external pretrained encoder passed into the torch module).
# TODO(synk): the real pretrained BERT encoder is an external module, not part
#             of this nn.Module's own code; replaced by a small synthetic one.
# ----------------------------------------------------------------------------
def _dense_params(key, fan_in, fan_out):
    w = jax.random.normal(key, (fan_in, fan_out), jnp.float32) * 0.02
    b = jnp.zeros((fan_out,), jnp.float32)
    return w, b


def init_bert_params(key, vocab, type_vocab, max_pos, H, n_layers, n_heads, Hi):
    keys = jax.random.split(key, 4 + n_layers)
    params = {
        "word": jax.random.normal(keys[0], (vocab, H), jnp.float32) * 0.02,
        "pos": jax.random.normal(keys[1], (max_pos, H), jnp.float32) * 0.02,
        "type": jax.random.normal(keys[2], (type_vocab, H), jnp.float32) * 0.02,
        "emb_ln_g": jnp.ones((H,), jnp.float32),
        "emb_ln_b": jnp.zeros((H,), jnp.float32),
        "layers": [],
    }
    for l in range(n_layers):
        lk = jax.random.split(keys[3 + l], 6)
        wq, bq = _dense_params(lk[0], H, H)
        wk, bk = _dense_params(lk[1], H, H)
        wv, bv = _dense_params(lk[2], H, H)
        wo, bo = _dense_params(lk[3], H, H)
        wi, bi = _dense_params(lk[4], H, Hi)
        wf, bf = _dense_params(lk[5], Hi, H)
        params["layers"].append({
            "wq": wq, "bq": bq, "wk": wk, "bk": bk, "wv": wv, "bv": bv,
            "wo": wo, "bo": bo, "wi": wi, "bi": bi, "wf": wf, "bf": bf,
            "ln1_g": jnp.ones((H,)), "ln1_b": jnp.zeros((H,)),
            "ln2_g": jnp.ones((H,)), "ln2_b": jnp.zeros((H,)),
        })
    wp, bp = _dense_params(keys[3 + n_layers - 1], H, H)  # pooler (deterministic)
    params["pool_w"], params["pool_b"] = wp, bp
    return params


def layer_norm(x, g, b, eps=1e-12):
    mu = jnp.mean(x, axis=-1, keepdims=True)
    var = jnp.mean((x - mu) ** 2, axis=-1, keepdims=True)
    return (x - mu) / jnp.sqrt(var + eps) * g + b


def bert_forward(params, input_ids, token_type_ids, attention_mask, n_heads):
    B, S = input_ids.shape
    H = params["word"].shape[1]
    d = H // n_heads

    emb = (params["word"][input_ids]
           + params["pos"][jnp.arange(S)][None, :, :]
           + params["type"][token_type_ids])
    x = layer_norm(emb, params["emb_ln_g"], params["emb_ln_b"])

    mask_bias = (1.0 - attention_mask.astype(jnp.float32))[:, None, None, :] * -1e4

    all_hidden_states = [x]
    for p in params["layers"]:
        q = (x @ p["wq"] + p["bq"]).reshape(B, S, n_heads, d).transpose(0, 2, 1, 3)
        k = (x @ p["wk"] + p["bk"]).reshape(B, S, n_heads, d).transpose(0, 2, 1, 3)
        v = (x @ p["wv"] + p["bv"]).reshape(B, S, n_heads, d).transpose(0, 2, 1, 3)
        scores = jnp.einsum("bhqd,bhkd->bhqk", q, k) / math.sqrt(d) + mask_bias
        probs = jax.nn.softmax(scores, axis=-1)
        ctx = jnp.einsum("bhqk,bhkd->bhqd", probs, v)
        ctx = ctx.transpose(0, 2, 1, 3).reshape(B, S, H)
        attn_out = ctx @ p["wo"] + p["bo"]
        x = layer_norm(x + attn_out, p["ln1_g"], p["ln1_b"])
        ffn = jax.nn.gelu(x @ p["wi"] + p["bi"]) @ p["wf"] + p["bf"]
        x = layer_norm(x + ffn, p["ln2_g"], p["ln2_b"])
        all_hidden_states.append(x)

    pooled = jnp.tanh(x[:, 0, :] @ params["pool_w"] + params["pool_b"])
    return x, pooled, all_hidden_states


# ----------------------------------------------------------------------------
# Bert_Spc_PET forward (glue + Pallas head kernel)
# ----------------------------------------------------------------------------
def bert_spc_pet_forward(bert_params, head_params, inputs, n_heads):
    text_bert_indices, bert_segments_ids, attention_mask = inputs
    _, pooled_output, all_hidden_states = bert_forward(
        bert_params, text_bert_indices, bert_segments_ids, attention_mask, n_heads)
    last_layer_hidden_states = all_hidden_states[-1]
    # dropout is identity at inference; token-1 slice + MLP head fused in Pallas:
    logits = pet_head(last_layer_hidden_states,
                      head_params["w1"], head_params["b1"],
                      head_params["w2"], head_params["b2"])
    return logits


if __name__ == "__main__":
    # Small shapes consistent with the module's forward.
    B, S = 2, 8
    H, n_heads, n_layers, Hi = 32, 4, 2, 64       # opt.bert_dim = 32
    label_dim = 4                                 # opt.label_dim = 4
    vocab, type_vocab, max_pos = 30, 2, 16

    key = jax.random.PRNGKey(0)
    k_bert, k_w1, k_w2, k_ids, k_seg = jax.random.split(key, 5)

    bert_params = init_bert_params(k_bert, vocab, type_vocab, max_pos,
                                   H, n_layers, n_heads, Hi)

    w1, b1 = _dense_params(k_w1, H, H // 2)
    w2, b2 = _dense_params(k_w2, H // 2, label_dim)
    head_params = {"w1": w1, "b1": b1, "w2": w2, "b2": b2}

    text_bert_indices = jax.random.randint(k_ids, (B, S), 0, vocab, dtype=jnp.int32)
    bert_segments_ids = (jax.random.randint(k_seg, (B, S), 0, 2, dtype=jnp.int32)
                         .sort(axis=-1))                       # 0s then 1s, BERT-style
    attention_mask = jnp.ones((B, S), dtype=jnp.int32)

    inputs = (text_bert_indices, bert_segments_ids, attention_mask)
    logits = bert_spc_pet_forward(bert_params, head_params, inputs, n_heads)
    logits = jax.block_until_ready(logits)

    # Cross-check the Pallas head against a plain-JAX reference of the same math.
    _, _, hs = bert_forward(bert_params, *inputs, n_heads)
    x_ref = hs[-1][:, 1, :]
    ref = jnp.maximum(x_ref @ w1 + b1, 0.0) @ w2 + b2
    assert logits.shape == (B, label_dim)
    assert jnp.allclose(logits, ref, atol=1e-5, rtol=1e-5)

    print("KERNEL_OK")
</pallas_src>

<mosaic_0001>
module attributes {stable_mosaic.version = 11 : i64} {
  func.func @pet_head_kernel(%arg0: i32, %arg1: memref<2x1x32xf32, #tpu.memory_space<vmem>>, %arg2: memref<32x128xf32, #tpu.memory_space<vmem>>, %arg3: memref<1x128xf32, #tpu.memory_space<vmem>>, %arg4: memref<128x128xf32, #tpu.memory_space<vmem>>, %arg5: memref<1x128xf32, #tpu.memory_space<vmem>>, %arg6: memref<2x128xf32, #tpu.memory_space<vmem>>) attributes {dimension_semantics = [#tpu.dimension_semantics<parallel>], iteration_bounds = array<i64: 1>, scalar_prefetch = 0 : i64, scratch_operands = 0 : i64, tpu.core_type = #tpu.core_type<tc>, window_params = [{transform_indices = @transform_0, window_bounds = array<i64: 2, 1, 32>}, {pipeline_mode = #tpu.pipeline_mode<synchronous>, transform_indices = @transform_1, window_bounds = array<i64: 32, 128>}, {pipeline_mode = #tpu.pipeline_mode<synchronous>, transform_indices = @transform_2, window_bounds = array<i64: 1, 128>}, {pipeline_mode = #tpu.pipeline_mode<synchronous>, transform_indices = @transform_3, window_bounds = array<i64: 128, 128>}, {pipeline_mode = #tpu.pipeline_mode<synchronous>, transform_indices = @transform_4, window_bounds = array<i64: 1, 128>}, {transform_indices = @transform_5, window_bounds = array<i64: 2, 128>}]} {
    %c0 = arith.constant 0 : index
    %c0_0 = arith.constant 0 : index
    %c0_1 = arith.constant 0 : index
    %0 = vector.load %arg1[%c0, %c0_0, %c0_1] : memref<2x1x32xf32, #tpu.memory_space<vmem>>, vector<2x1x32xf32>
    %1 = vector.shape_cast %0 : vector<2x1x32xf32> to vector<2x32xf32>
    %c0_2 = arith.constant 0 : index
    %c0_3 = arith.constant 0 : index
    %2 = vector.load %arg2[%c0_2, %c0_3] : memref<32x128xf32, #tpu.memory_space<vmem>>, vector<32x128xf32>
    %cst = arith.constant dense<0.000000e+00> : vector<2x128xf32>
    %3 = tpu.matmul %1, %2, %cst {dimension_numbers = #tpu.dot_dimension_numbers<[1], [0], [0], [1], [0, 0, 1, 1], [], []>} : vector<2x32xf32>, vector<32x128xf32>, vector<2x128xf32> -> vector<2x128xf32>
    %c0_4 = arith.constant 0 : index
    %c0_5 = arith.constant 0 : index
    %4 = vector.load %arg3[%c0_4, %c0_5] : memref<1x128xf32, #tpu.memory_space<vmem>>, vector<1x128xf32>
    %5 = vector.broadcast %4 : vector<1x128xf32> to vector<2x128xf32>
    %6 = arith.addf %3, %5 : vector<2x128xf32>
    %cst_6 = arith.constant 0.000000e+00 : f32
    %7 = vector.broadcast %cst_6 : f32 to vector<2x128xf32>
    %8 = arith.maximumf %6, %7 : vector<2x128xf32>
    %c0_7 = arith.constant 0 : index
    %c0_8 = arith.constant 0 : index
    %9 = vector.load %arg4[%c0_7, %c0_8] : memref<128x128xf32, #tpu.memory_space<vmem>>, vector<128x128xf32>
    %cst_9 = arith.constant dense<0.000000e+00> : vector<2x128xf32>
    %10 = tpu.matmul %8, %9, %cst_9 {dimension_numbers = #tpu.dot_dimension_numbers<[1], [0], [0], [1], [0, 0, 1, 1], [], []>} : vector<2x128xf32>, vector<128x128xf32>, vector<2x128xf32> -> vector<2x128xf32>
    %c0_10 = arith.constant 0 : index
    %c0_11 = arith.constant 0 : index
    %11 = vector.load %arg5[%c0_10, %c0_11] : memref<1x128xf32, #tpu.memory_space<vmem>>, vector<1x128xf32>
    %12 = vector.broadcast %11 : vector<1x128xf32> to vector<2x128xf32>
    %13 = arith.addf %10, %12 : vector<2x128xf32>
    %c0_12 = arith.constant 0 : index
    %c0_13 = arith.constant 0 : index
    %14 = vector.load %arg6[%c0_12, %c0_13] : memref<2x128xf32, #tpu.memory_space<vmem>>, vector<2x128xf32>
    tpu.vector_store %arg6[%c0_12, %c0_13], %13 {strides = array<i32>} : memref<2x128xf32, #tpu.memory_space<vmem>>, vector<2x128xf32>,
    return
  }
  func.func @transform_0(%arg0: i32) -> (i32, i32, i32) {
    %c0_i32 = arith.constant 0 : i32
    %c0_i32_0 = arith.constant 0 : i32
    %c0_i32_1 = arith.constant 0 : i32
    return %arg0, %c0_i32, %c0_i32_0 : i32, i32, i32
  }
  func.func @transform_1(%arg0: i32) -> (i32, i32) {
    %c0_i32 = arith.constant 0 : i32
    %c0_i32_0 = arith.constant 0 : i32
    %c0_i32_1 = arith.constant 0 : i32
    return %c0_i32, %c0_i32_0 : i32, i32
  }
  func.func @transform_2(%arg0: i32) -> (i32, i32) {
    %c0_i32 = arith.constant 0 : i32
    %c0_i32_0 = arith.constant 0 : i32
    %c0_i32_1 = arith.constant 0 : i32
    return %c0_i32, %c0_i32_0 : i32, i32
  }
  func.func @transform_3(%arg0: i32) -> (i32, i32) {
    %c0_i32 = arith.constant 0 : i32
    %c0_i32_0 = arith.constant 0 : i32
    %c0_i32_1 = arith.constant 0 : i32
    return %c0_i32, %c0_i32_0 : i32, i32
  }
  func.func @transform_4(%arg0: i32) -> (i32, i32) {
    %c0_i32 = arith.constant 0 : i32
    %c0_i32_0 = arith.constant 0 : i32
    %c0_i32_1 = arith.constant 0 : i32
    return %c0_i32, %c0_i32_0 : i32, i32
  }
  func.func @transform_5(%arg0: i32) -> (i32, i32) {
    %c0_i32 = arith.constant 0 : i32
    %c0_i32_0 = arith.constant 0 : i32
    return %arg0, %c0_i32 : i32, i32
  }
}

</mosaic_0001>

<bundles_post_ra>
// kernel: tpu_custom_call.1
= control target key start
LH: loop header
LB: loop body
LE: loop exit
PB: predicated region body
PF: predicated region fallthrough
CT: control target
= control target key end

     0   :  { %10 = vsyncpa [#allocation3], 0  ;;  %s525_s0 = inlined_call_operand.hbm [shape: f32[2,1,32], index: 0, kind: input, shape index: {}]   ;;  %s526_s1 = inlined_call_operand.hbm [shape: f32[32,128], index: 1, kind: input, shape index: {}]   ;;  %s527_s2 = inlined_call_operand.vmem [shape: f32[1,128], index: 2, kind: input, shape index: {}]   ;;  %s528_s3 = inlined_call_operand.hbm [shape: f32[128,128], index: 3, kind: input, shape index: {}]   ;;  %s529_s4 = inlined_call_operand.vmem [shape: f32[1,128], index: 4, kind: input, shape index: {}]   ;;  %s530_s5 = inlined_call_operand.hbm [shape: f32[2,128], index: 5, kind: output, shape index: {}]  }
   0x1   :  { %11 = vsyncpa [#allocation6], 0 }
   0x2   :  { %12 = vsyncpa [#allocation4], 0  ;;  %s444_s18 = smov [#allocation5]  }
   0x3   :  { %s30_s19 = sshll.u32 %s444_s18, 4  ;;  %s31_s19 = int_to_ptr.vmem [resolvable:$true] %s30_s19 }
   0x4   :  { %s366_s20 = scalar_lea.vmem %s31_s19, 512  ;;  %p371_p1 = scmp.lt.s32.totalorder %s31_s19, %s31_s19 }
   0x5   :  { %p367_p0 = scmp.ne.s32.totalorder %s31_s19, %s366_s20  ;;  %p372_p2 = scmp.lt.s32.totalorder %s366_s20, %s366_s20 }
   0x7   :  { %p373_p3 = por %p372_p2, %p371_p1 }
   0x9   :  { %p374_p4 = pnand %p373_p3, %p367_p0 }
   0xb   :  { %377 = shalt.err (!%p374_p4)
}
   0xc   :  { %s445_s21 = smov 128   ;;  %s446_s22 = smov 8  }
   0xd   :  { %36 = dma.hbm_to_vmem [thread:$0]  %s526_s1, 512, %s31_s19, [#allocation6], %s445_s21, %s445_s21, %s446_s22  }
   0xe   :  { %s447_s25 = smov [#allocation2]  }
   0xf   :  { %s18_s26 = sshll.u32 %s447_s25, 4  ;;  %s19_s26 = int_to_ptr.vmem [resolvable:$true] %s18_s26 }
  0x10   :  { %s386_s27 = scalar_lea.vmem %s19_s26, 32  ;;  %p391_p6 = scmp.lt.s32.totalorder %s19_s26, %s19_s26 }
  0x11   :  { %p387_p5 = scmp.ne.s32.totalorder %s19_s26, %s386_s27  ;;  %p392_p7 = scmp.lt.s32.totalorder %s386_s27, %s386_s27 }
  0x13   :  { %p393_p8 = por %p392_p7, %p391_p6 }
  0x15   :  { %p394_p9 = pnand %p393_p8, %p387_p5 }
  0x17   :  { %397 = shalt.err (!%p394_p9)
}
  0x18   :  { %s448_s28 = smov 16   ;;  %s449_s29 = smov 1  }
  0x19   :  { %24 = dma.hbm_to_vmem [thread:$0]  %s525_s0, 32, %s19_s26, [#allocation3], %s448_s28, %s448_s28, %s449_s29  }
  0x1a   :  { %s450_s7 = smov [#allocation7]  }
  0x1b   :  { %s44_s8 = sshll.u32 %s450_s7, 4  ;;  %s45_s8 = int_to_ptr.vmem [resolvable:$true] %s44_s8 }
  0x1c   :  { %s406_s1 = scalar_lea.vmem %s45_s8, 2048  ;;  %p411_p11 = scmp.lt.s32.totalorder %s45_s8, %s45_s8 }
  0x1d   :  { %p407_p10 = scmp.ne.s32.totalorder %s45_s8, %s406_s1  ;;  %p412_p12 = scmp.lt.s32.totalorder %s406_s1, %s406_s1 }
  0x1f   :  { %p413_p13 = por %p412_p12, %p411_p11 }
  0x21   :  { %p414_p0 = pnand %p413_p13, %p407_p10 }
  0x23   :  { %417 = shalt.err (!%p414_p0)
}
  0x24   :  { %50 = dma.hbm_to_vmem [thread:$0]  %s528_s3, 2048, %s45_s8, [#allocation6], %s445_s21, %s445_s21, %s446_s22  }
  0x25   :  { %438 = dma.done.wait [#allocation3], 32  }
  0x26   :  { %439 = vsyncadd [#allocation3], 4294967264 }
  0x27   :  { %440 = dma.done.wait [#allocation6], 2560  }
  0x28   :  { %441 = vsyncadd [#allocation6], 4294964736  ;;  %v81_v0 = vlaneseq  ;;  %v451_v1 = vmov 0.0   ;;  %vm452_vm0 = vmmov 0   ;;  %v453_v2 = vmov 1966171168  }
  0x29   :  { %301 = vmatprep.subr.mxu0 %v451_v1  ;;  %309 = vmatprep.mubr.msk.f32.mxu0 %vm452_vm0, %v451_v1  ;;  %v79_v3 = vunpack.c.l.s4 %v453_v2  ;;  %v67_v6 = vld [vmem:[#allocation5 + $0x18] sm:$0xff]  ;;  %v66_v7 = vld [vmem:[#allocation5 + $0x10] sm:$0xff]  ;;  %v65_v11 = vld [vmem:[#allocation5 + $0x8] sm:$0xff]  ;;  %vm92_vm1 = vcmask 261120   ;;  %s454_s13 = smov [#allocation8]  }
  0x2a   :  { %312 = vmatprep.subr.mxu1 %v451_v1  ;;  %344 = vmatprep.mubr.msk.f32.mxu1 %vm452_vm0, %v451_v1  ;;  %v82_v5 = vshrl.u32 %v81_v0, 7  ;;  %v62_v9 = vld [vmem:[#allocation2] sm:$0x1]  ;;  %v63_v10 = vld [vmem:[#allocation2 + $0x1] sm:$0x1]  ;;  %v180_v14 = vld [vmem:[#allocation7 + $0x70] sm:$0xff] }
  0x2b   :  { %v80_v4 = vunpack.c.0.s8 %v79_v3  ;;  %302 = vmatpush3.msra.mxu0 %v67_v6  ;;  %v77_v12 = vcombine.low %v62_v9, %v63_v10  ;;  %v181_v13 = vld [vmem:[#allocation7 + $0x78] sm:$0xff]  ;;  %v64_v15 = vld [vmem:[#allocation5] sm:$0xff]  ;;  %v179_v17 = vld [vmem:[#allocation7 + $0x68] sm:$0xff]  ;;  %s266_s14 = sshll.u32 %s454_s13, 4  ;;  %s267_s14 = int_to_ptr.vmem [resolvable:$true] %s266_s14 }
  0x2c   :  { %303 = vmatprep.subr.mxu0 %v451_v1  ;;  %313 = vmatpush3.msra.mxu1 %v181_v13  ;;  %v178_v19 = vld [vmem:[#allocation7 + $0x60] sm:$0xff]  ;;  %v177_v20 = vld [vmem:[#allocation7 + $0x58] sm:$0xff]  ;;  %v176_v21 = vld [vmem:[#allocation7 + $0x50] sm:$0xff]  ;;  %s418_s15 = scalar_lea.vmem %s267_s14, 32  ;;  %p423_p2 = scmp.lt.s32.totalorder %s267_s14, %s267_s14 }
  0x2d   :  { %v83_v8 = vsub.s32 %v80_v4, %v82_v5  ;;  %304 = vmatpush3.msra.mxu0 %v66_v7  ;;  %314 = vmatprep.subr.mxu1 %v451_v1  ;;  %v175_v22 = vld [vmem:[#allocation7 + $0x48] sm:$0xff]  ;;  %v174_v23 = vld [vmem:[#allocation7 + $0x40] sm:$0xff]  ;;  %v173_v24 = vld [vmem:[#allocation7 + $0x38] sm:$0xff]  ;;  %p419_p1 = scmp.ne.s32.totalorder %s267_s14, %s418_s15  ;;  %p424_p3 = scmp.lt.s32.totalorder %s418_s15, %s418_s15 }
  0x2e   :  { %305 = vmatprep.subr.mxu0 %v451_v1  ;;  %315 = vmatpush3.msra.mxu1 %v180_v14  ;;  %v172_v25 = vld [vmem:[#allocation7 + $0x30] sm:$0xff]  ;;  %v171_v26 = vld [vmem:[#allocation7 + $0x28] sm:$0xff]  ;;  %v170_v27 = vld [vmem:[#allocation7 + $0x20] sm:$0xff] }
  0x2f   :  { %v84_v16 = vrot.slane %v77_v12, %v83_v8  ;;  %306 = vmatpush3.msra.mxu0 %v65_v11  ;;  %316 = vmatprep.subr.mxu1 %v451_v1  ;;  %v169_v28 = vld [vmem:[#allocation7 + $0x18] sm:$0xff]  ;;  %v168_v29 = vld [vmem:[#allocation7 + $0x10] sm:$0xff]  ;;  %v167_v30 = vld [vmem:[#allocation7 + $0x8] sm:$0xff]  ;;  %p425_p4 = por %p424_p3, %p423_p2 }
  0x30   :  { %307 = vmatprep.subr.mxu0 %v451_v1  ;;  %317 = vmatpush3.msra.mxu1 %v179_v17  ;;  %v166_v31 = vld [vmem:[#allocation7] sm:$0xff]  ;;  %v276_v32 = vld [vmem:[%s527_s2] ss:$0 sm:$0xff] }
  0x31   :  { %v91_v18 = vrot.slane %v84_v16, %v83_v8  ;;  %308 = vmatpush3.msra.mxu0 %v64_v15  ;;  %318 = vmatprep.subr.mxu1 %v451_v1  ;;  %v278_v37 = vld [vmem:[%s529_s4] ss:$0 sm:$0xff]  ;;  %p426_p5 = pnand %p425_p4, %p419_p1 }
  0x32   :  { %319 = vmatpush3.msra.mxu1 %v178_v19 }
  0x33   :  { %310 = vmatmul.mubr.msk.f32.vlgmr.msra.gmra.mxu0 %vm92_vm1, %v91_v18  ;;  %320 = vmatprep.subr.mxu1 %v451_v1 }
  0x34   :  { %321 = vmatpush3.msra.mxu1 %v177_v20 }
  0x35   :  { %322 = vmatprep.subr.mxu1 %v451_v1 }
  0x36   :  { %323 = vmatpush3.msra.mxu1 %v176_v21 }
  0x37   :  { %324 = vmatprep.subr.mxu1 %v451_v1 }
  0x38   :  { %325 = vmatpush3.msra.mxu1 %v175_v22 }
  0x39   :  { %326 = vmatprep.subr.mxu1 %v451_v1 }
  0x3a   :  { %327 = vmatpush3.msra.mxu1 %v174_v23 }
  0x3b   :  { %328 = vmatprep.subr.mxu1 %v451_v1 }
  0x3c   :  { %329 = vmatpush3.msra.mxu1 %v173_v24 }
  0x3d   :  { %330 = vmatprep.subr.mxu1 %v451_v1 }
  0x3e   :  { %331 = vmatpush3.msra.mxu1 %v172_v25 }
  0x3f   :  { %332 = vmatprep.subr.mxu1 %v451_v1 }
  0x40   :  { %333 = vmatpush3.msra.mxu1 %v171_v26 }
  0x41   :  { %334 = vmatprep.subr.mxu1 %v451_v1 }
  0x42   :  { %335 = vmatpush3.msra.mxu1 %v170_v27 }
  0x43   :  { %336 = vmatprep.subr.mxu1 %v451_v1 }
  0x44   :  { %337 = vmatpush3.msra.mxu1 %v169_v28 }
  0x45   :  { %338 = vmatprep.subr.mxu1 %v451_v1 }
  0x46   :  { %339 = vmatpush3.msra.mxu1 %v168_v29 }
  0x47   :  { %340 = vmatprep.subr.mxu1 %v451_v1 }
  0x48   :  { %341 = vmatpush3.msra.mxu1 %v167_v30 }
  0x49   :  { %342 = vmatprep.subr.mxu1 %v451_v1 }
  0x4a   :  { %343 = vmatpush3.msra.mxu1 %v166_v31 }
  0xf3   :  { %v161_v33 = vpop.f32.mrf.mxu0 }
  0xf4   :  { %v162_v34 = vadd.f32 %v276_v32, %v161_v33 }
  0xf5   :  { %v311_v35 = vpop.f32.mrf.mxu0 }
  0xf6   :  { %v165_v36 = vmax.f32 %v162_v34, 0.0 }
  0xf8   :  { %345 = vmatmul.mubr.f32.vlgmr.msra.gmra.mxu1 %v165_v36 }
 0x1b8   :  { %v255_v38 = vpop.f32.mrf.mxu1 }
 0x1b9   :  { %v256_v39 = vadd.f32 %v278_v37, %v255_v38 }
 0x1ba   :  { %v346_v40 = vpop.f32.mrf.mxu1 }
 0x1bb   :  { %259 = vst [vmem:[#allocation8] sm:$0x3] %v256_v39 }
 0x1bc   :  { %429 = shalt.err (!%p426_p5)
}
 0x1bd   :  { %269 = dma.vmem_to_hbm [thread:$0]  %s267_s14, 32, %s530_s5, [#allocation4]  }
 0x1be   :  { %442 = dma.done.wait [#allocation4], 32  }
 0x1bf   :  { %443 = vsyncadd [#allocation4], 4294967264 }
 0x1c0   :  { %273 = vsyncpa [#allocation3], 1 }
 0x1c1   :  { %274 = vsyncpa [#allocation6], 1 }
 0x1c2   :  { %275 = vsyncpa [#allocation4], 1 }

</bundles_post_ra>
